<compile_context>
chip_gen: v7x
topology: tpu7x:2x2x1
jax: 0.10.0
libtpu: 0.0.40
codegen_flags: <defaults>
</compile_context>

<pallas_src>
import functools

import jax
import jax.numpy as jnp
from jax.experimental import pallas as pl
from jax.experimental.pallas import tpu as pltpu


def _round_up(n, m):
    return (n + m - 1) // m * m


def _channel_mix_kernel(x_ref, gamma_ref, beta_ref, w1_ref, b1_ref,
                        w2_ref, b2_ref, o_ref, *, true_c, matmul_dtype):
    # Elementwise / LN / GELU math in f32 (numerics + v5e has no bf16 VPU/EUP).
    x = x_ref[...].astype(jnp.float32)

    # --- LayerNorm over the true channel count (eps = 1e-5, PyTorch default).
    # Any channel padding is zero-filled, so sums over the (padded) lane axis
    # are exact; using E[x^2] - mean^2 keeps the variance unbiased by padding.
    inv_c = jnp.float32(1.0 / true_c)
    mean = jnp.sum(x, axis=-1, keepdims=True) * inv_c
    var = jnp.sum(x * x, axis=-1, keepdims=True) * inv_c - mean * mean
    xn = (x - mean) * jax.lax.rsqrt(var + 1e-5)
    # gamma/beta are zero in padded lanes -> padded lanes of xn become 0.
    xn = xn * gamma_ref[...] + beta_ref[...]

    # --- Linear1 on the MXU: bf16 (or f32) operands, f32 accumulation.
    h = jnp.dot(xn.astype(matmul_dtype), w1_ref[...],
                preferred_element_type=jnp.float32)
    h = h + b1_ref[...]

    # --- Exact GELU (erf-based, matches nn.GELU default).
    h = 0.5 * h * (1.0 + jax.lax.erf(h * jnp.float32(0.7071067811865476)))

    # --- Linear2 on the MXU.
    out = jnp.dot(h.astype(matmul_dtype), w2_ref[...],
                  preferred_element_type=jnp.float32)
    out = out + b2_ref[...]

    o_ref[...] = out.astype(o_ref.dtype)


def channel_mix_pallas(x, gamma, beta, w1, b1, w2, b2, *,
                       row_tile=256,
                       matmul_dtype=jnp.bfloat16,
                       single_buffer_weights=True):
    """x: (B, S, C). gamma/beta: (C,). w1: (C, H), b1: (H,), w2: (H, C), b2: (C,)."""
    B, S, C = x.shape
    H = w1.shape[1]
    rows = B * S

    # Lane-dense channel / hidden dims (multiples of 128).  Real mixer dims
    # already satisfy this; toy dims get zero-padded (padding is inert).
    C_pad = _round_up(C, 128)
    H_pad = _round_up(H, 128)

    # Large row tiles keep the 128/256-row MXU fed and amortize the ~0.35us
    # per-grid-step overhead.  Tiny inputs just collapse to a single tile.
    row_tile_eff = min(row_tile, _round_up(rows, 8))
    rows_pad = _round_up(rows, row_tile_eff)

    f32 = jnp.float32
    x2 = jnp.pad(x.reshape(rows, C), ((0, rows_pad - rows), (0, C_pad - C)))
    gamma2 = jnp.pad(gamma.astype(f32), (0, C_pad - C)).reshape(1, C_pad)
    beta2 = jnp.pad(beta.astype(f32), (0, C_pad - C)).reshape(1, C_pad)
    w1p = jnp.pad(w1, ((0, C_pad - C), (0, H_pad - H))).astype(matmul_dtype)
    b1p = jnp.pad(b1.astype(f32), (0, H_pad - H)).reshape(1, H_pad)
    w2p = jnp.pad(w2, ((0, H_pad - H), (0, C_pad - C))).astype(matmul_dtype)
    b2p = jnp.pad(b2.astype(f32), (0, C_pad - C)).reshape(1, C_pad)

    grid = (rows_pad // row_tile_eff,)

    # Explicit VMEM budget: resident weights (single- or double-buffered) +
    # double-buffered x/out tiles + f32 intermediates, with headroom.  Clamped
    # to [32 MiB, 64 MiB] which is legal on every generation (v7x = 64 MiB
    # physical) and above v5e's 16 MiB scoped default.
    # TODO(synk): for C*H too large to keep both weights resident, add a
    # K-tiled reduction grid axis with a VMEM f32 accumulator + pl.when
    # init/finalize instead of relying on fully-resident weights.
    w_bufs = 1 if single_buffer_weights else 2
    itm_w = jnp.dtype(matmul_dtype).itemsize
    itm_x = jnp.dtype(x.dtype).itemsize
    vmem_est = (
        2 * C_pad * H_pad * itm_w * w_bufs          # w1 + w2
        + 4 * row_tile_eff * C_pad * itm_x          # x tile + out tile (double-buffered)
        + 2 * (3 * C_pad + H_pad) * 4               # gamma/beta/b1/b2
        + 2 * row_tile_eff * H_pad * 4              # hidden intermediate (f32)
        + 2 * row_tile_eff * C_pad * 4              # f32 temporaries
    )
    vmem_limit = int(min(max(int(vmem_est * 1.5) + (4 << 20), 32 << 20), 64 << 20))

    kernel = functools.partial(_channel_mix_kernel, true_c=C,
                               matmul_dtype=matmul_dtype)

    def build(buffered_weights):
        w_kwargs = ({"pipeline_mode": pl.Buffered(1)} if buffered_weights else {})
        return pl.pallas_call(
            kernel,
            out_shape=jax.ShapeDtypeStruct((rows_pad, C_pad), x.dtype),
            grid_spec=pltpu.PrefetchScalarGridSpec(
                num_scalar_prefetch=0,
                grid=grid,
                in_specs=[
                    pl.BlockSpec((row_tile_eff, C_pad), lambda i: (i, 0)),       # x
                    pl.BlockSpec((1, C_pad), lambda i: (0, 0)),                  # gamma
                    pl.BlockSpec((1, C_pad), lambda i: (0, 0)),                  # beta
                    pl.BlockSpec((C_pad, H_pad), lambda i: (0, 0), **w_kwargs),  # w1
                    pl.BlockSpec((1, H_pad), lambda i: (0, 0)),                  # b1
                    pl.BlockSpec((H_pad, C_pad), lambda i: (0, 0), **w_kwargs),  # w2
                    pl.BlockSpec((1, C_pad), lambda i: (0, 0)),                  # b2
                ],
                out_specs=pl.BlockSpec((row_tile_eff, C_pad), lambda i: (i, 0)),
            ),
            compiler_params=pltpu.CompilerParams(
                dimension_semantics=("parallel",),   # lets v7x split rows across its 2 TCs
                vmem_limit_bytes=vmem_limit),
        )

    args = (x2, gamma2, beta2, w1p, b1p, w2p, b2p)
    if single_buffer_weights:
        try:
            out2 = build(True)(*args)
        except Exception:
            # Fallback for jax versions that reject pl.Buffered(1) on a
            # grid-invariant BlockSpec; semantics are identical.
            out2 = build(False)(*args)
    else:
        out2 = build(False)(*args)

    return out2[:rows, :C].reshape(B, S, C)


def _reference(x, gamma, beta, w1, b1, w2, b2):
    xf = x.astype(jnp.float32)
    mean = jnp.mean(xf, axis=-1, keepdims=True)
    var = jnp.mean((xf - mean) ** 2, axis=-1, keepdims=True)
    xn = (xf - mean) * jax.lax.rsqrt(var + 1e-5) * gamma + beta
    h = xn @ w1 + b1
    h = 0.5 * h * (1.0 + jax.lax.erf(h / jnp.sqrt(2.0)))
    return (h @ w2 + b2).astype(x.dtype)


if __name__ == "__main__":
    # Small demo shapes: batch=2, num_patches=8, in_dim=32, hidden_dim=64
    B, S, C, H = 2, 8, 32, 64
    key = jax.random.PRNGKey(0)
    kx, kw1, kb1, kw2, kb2 = jax.random.split(key, 5)

    x = jax.random.normal(kx, (B, S, C), dtype=jnp.float32)

    # Deterministic synthetic parameters (mirror the module's shapes).
    gamma = jnp.ones((C,), jnp.float32)                       # LayerNorm weight
    beta = jnp.zeros((C,), jnp.float32)                       # LayerNorm bias
    w1 = jax.random.normal(kw1, (C, H), jnp.float32) * 0.02   # Linear1 (transposed)
    b1 = jax.random.normal(kb1, (H,), jnp.float32) * 0.02
    w2 = jax.random.normal(kw2, (H, C), jnp.float32) * 0.02   # Linear2 (transposed)
    b2 = jax.random.normal(kb2, (C,), jnp.float32) * 0.02

    ref = _reference(x, gamma, beta, w1, b1, w2, b2)

    # Optimized path: bf16 MXU operands, f32 accumulation / elementwise.
    out_bf16 = channel_mix_pallas(x, gamma, beta, w1, b1, w2, b2)
    out_bf16 = jax.block_until_ready(out_bf16)
    assert out_bf16.shape == (B, S, C)
    assert jnp.allclose(out_bf16, ref, atol=5e-3, rtol=5e-2), \
        float(jnp.max(jnp.abs(out_bf16 - ref)))

    # Strict-parity path: f32 MXU operands, tight tolerance.
    out_f32 = channel_mix_pallas(x, gamma, beta, w1, b1, w2, b2,
                                 matmul_dtype=jnp.float32)
    out_f32 = jax.block_until_ready(out_f32)
    assert jnp.allclose(out_f32, ref, atol=1e-5, rtol=1e-5), \
        float(jnp.max(jnp.abs(out_f32 - ref)))

    print("KERNEL_OK")
</pallas_src>

<mosaic_0001>
module attributes {stable_mosaic.version = 11 : i64} {
  func.func @_channel_mix_kernel(%arg0: i32, %arg1: memref<16x128xf32, #tpu.memory_space<vmem>>, %arg2: memref<1x128xf32, #tpu.memory_space<vmem>>, %arg3: memref<1x128xf32, #tpu.memory_space<vmem>>, %arg4: memref<128x128xbf16, #tpu.memory_space<vmem>>, %arg5: memref<1x128xf32, #tpu.memory_space<vmem>>, %arg6: memref<128x128xbf16, #tpu.memory_space<vmem>>, %arg7: memref<1x128xf32, #tpu.memory_space<vmem>>, %arg8: memref<16x128xf32, #tpu.memory_space<vmem>>) attributes {dimension_semantics = [#tpu.dimension_semantics<parallel>], iteration_bounds = array<i64: 1>, scalar_prefetch = 0 : i64, scratch_operands = 0 : i64, tpu.core_type = #tpu.core_type<tc>, window_params = [{transform_indices = @transform_0, window_bounds = array<i64: 16, 128>}, {pipeline_mode = #tpu.pipeline_mode<synchronous>, transform_indices = @transform_1, window_bounds = array<i64: 1, 128>}, {pipeline_mode = #tpu.pipeline_mode<synchronous>, transform_indices = @transform_2, window_bounds = array<i64: 1, 128>}, {pipeline_mode = #tpu.pipeline_mode<synchronous>, transform_indices = @transform_3, window_bounds = array<i64: 128, 128>}, {pipeline_mode = #tpu.pipeline_mode<synchronous>, transform_indices = @transform_4, window_bounds = array<i64: 1, 128>}, {pipeline_mode = #tpu.pipeline_mode<synchronous>, transform_indices = @transform_5, window_bounds = array<i64: 128, 128>}, {pipeline_mode = #tpu.pipeline_mode<synchronous>, transform_indices = @transform_6, window_bounds = array<i64: 1, 128>}, {transform_indices = @transform_7, window_bounds = array<i64: 16, 128>}]} {
    %c0 = arith.constant 0 : index
    %c0_0 = arith.constant 0 : index
    %0 = vector.load %arg1[%c0, %c0_0] : memref<16x128xf32, #tpu.memory_space<vmem>>, vector<16x128xf32>
    %cst = arith.constant dense<0.000000e+00> : vector<16xf32>
    %1 = vector.multi_reduction <add>, %0, %cst [1] : vector<16x128xf32> to vector<16xf32>
    %2 = vector.shape_cast %1 : vector<16xf32> to vector<16x1xf32>
    %cst_1 = arith.constant 3.125000e-02 : f32
    %3 = vector.broadcast %cst_1 : f32 to vector<16x1xf32>
    %4 = arith.mulf %2, %3 : vector<16x1xf32>
    %5 = arith.mulf %0, %0 : vector<16x128xf32>
    %cst_2 = arith.constant dense<0.000000e+00> : vector<16xf32>
    %6 = vector.multi_reduction <add>, %5, %cst_2 [1] : vector<16x128xf32> to vector<16xf32>
    %7 = vector.shape_cast %6 : vector<16xf32> to vector<16x1xf32>
    %cst_3 = arith.constant 3.125000e-02 : f32
    %8 = vector.broadcast %cst_3 : f32 to vector<16x1xf32>
    %9 = arith.mulf %7, %8 : vector<16x1xf32>
    %10 = arith.mulf %4, %4 : vector<16x1xf32>
    %11 = arith.subf %9, %10 : vector<16x1xf32>
    %12 = vector.broadcast %4 : vector<16x1xf32> to vector<16x128xf32>
    %13 = arith.subf %0, %12 : vector<16x128xf32>
    %cst_4 = arith.constant 9.99999974E-6 : f32
    %14 = vector.broadcast %cst_4 : f32 to vector<16x1xf32>
    %15 = arith.addf %11, %14 : vector<16x1xf32>
    %16 = math.rsqrt %15 : vector<16x1xf32>
    %17 = vector.broadcast %16 : vector<16x1xf32> to vector<16x128xf32>
    %18 = arith.mulf %13, %17 : vector<16x128xf32>
    %c0_5 = arith.constant 0 : index
    %c0_6 = arith.constant 0 : index
    %19 = vector.load %arg2[%c0_5, %c0_6] : memref<1x128xf32, #tpu.memory_space<vmem>>, vector<1x128xf32>
    %20 = vector.broadcast %19 : vector<1x128xf32> to vector<16x128xf32>
    %21 = arith.mulf %18, %20 : vector<16x128xf32>
    %c0_7 = arith.constant 0 : index
    %c0_8 = arith.constant 0 : index
    %22 = vector.load %arg3[%c0_7, %c0_8] : memref<1x128xf32, #tpu.memory_space<vmem>>, vector<1x128xf32>
    %23 = vector.broadcast %22 : vector<1x128xf32> to vector<16x128xf32>
    %24 = arith.addf %21, %23 : vector<16x128xf32>
    %25 = arith.truncf %24 : vector<16x128xf32> to vector<16x128xbf16>
    %c0_9 = arith.constant 0 : index
    %c0_10 = arith.constant 0 : index
    %26 = vector.load %arg4[%c0_9, %c0_10] : memref<128x128xbf16, #tpu.memory_space<vmem>>, vector<128x128xbf16>
    %cst_11 = arith.constant dense<0.000000e+00> : vector<16x128xf32>
    %27 = tpu.matmul %25, %26, %cst_11 {dimension_numbers = #tpu.dot_dimension_numbers<[1], [0], [0], [1], [0, 0, 1, 1], [], []>} : vector<16x128xbf16>, vector<128x128xbf16>, vector<16x128xf32> -> vector<16x128xf32>
    %c0_12 = arith.constant 0 : index
    %c0_13 = arith.constant 0 : index
    %28 = vector.load %arg5[%c0_12, %c0_13] : memref<1x128xf32, #tpu.memory_space<vmem>>, vector<1x128xf32>
    %29 = vector.broadcast %28 : vector<1x128xf32> to vector<16x128xf32>
    %30 = arith.addf %27, %29 : vector<16x128xf32>
    %cst_14 = arith.constant 5.000000e-01 : f32
    %31 = vector.broadcast %cst_14 : f32 to vector<16x128xf32>
    %32 = arith.mulf %31, %30 : vector<16x128xf32>
    %cst_15 = arith.constant 0.707106769 : f32
    %33 = vector.broadcast %cst_15 : f32 to vector<16x128xf32>
    %34 = arith.mulf %30, %33 : vector<16x128xf32>
    %35 = math.erf %34 : vector<16x128xf32>
    %cst_16 = arith.constant 1.000000e+00 : f32
    %36 = vector.broadcast %cst_16 : f32 to vector<16x128xf32>
    %37 = arith.addf %36, %35 : vector<16x128xf32>
    %38 = arith.mulf %32, %37 : vector<16x128xf32>
    %39 = arith.truncf %38 : vector<16x128xf32> to vector<16x128xbf16>
    %c0_17 = arith.constant 0 : index
    %c0_18 = arith.constant 0 : index
    %40 = vector.load %arg6[%c0_17, %c0_18] : memref<128x128xbf16, #tpu.memory_space<vmem>>, vector<128x128xbf16>
    %cst_19 = arith.constant dense<0.000000e+00> : vector<16x128xf32>
    %41 = tpu.matmul %39, %40, %cst_19 {dimension_numbers = #tpu.dot_dimension_numbers<[1], [0], [0], [1], [0, 0, 1, 1], [], []>} : vector<16x128xbf16>, vector<128x128xbf16>, vector<16x128xf32> -> vector<16x128xf32>
    %c0_20 = arith.constant 0 : index
    %c0_21 = arith.constant 0 : index
    %42 = vector.load %arg7[%c0_20, %c0_21] : memref<1x128xf32, #tpu.memory_space<vmem>>, vector<1x128xf32>
    %43 = vector.broadcast %42 : vector<1x128xf32> to vector<16x128xf32>
    %44 = arith.addf %41, %43 : vector<16x128xf32>
    %c0_22 = arith.constant 0 : index
    %c0_23 = arith.constant 0 : index
    %45 = vector.load %arg8[%c0_22, %c0_23] : memref<16x128xf32, #tpu.memory_space<vmem>>, vector<16x128xf32>
    tpu.vector_store %arg8[%c0_22, %c0_23], %44 {strides = array<i32>} : memref<16x128xf32, #tpu.memory_space<vmem>>, vector<16x128xf32>,
    return
  }
  func.func @transform_0(%arg0: i32) -> (i32, i32) {
    %c0_i32 = arith.constant 0 : i32
    %c0_i32_0 = arith.constant 0 : i32
    return %arg0, %c0_i32 : i32, i32
  }
  func.func @transform_1(%arg0: i32) -> (i32, i32) {
    %c0_i32 = arith.constant 0 : i32
    %c0_i32_0 = arith.constant 0 : i32
    %c0_i32_1 = arith.constant 0 : i32
    return %c0_i32, %c0_i32_0 : i32, i32
  }
  func.func @transform_2(%arg0: i32) -> (i32, i32) {
    %c0_i32 = arith.constant 0 : i32
    %c0_i32_0 = arith.constant 0 : i32
    %c0_i32_1 = arith.constant 0 : i32
    return %c0_i32, %c0_i32_0 : i32, i32
  }
  func.func @transform_3(%arg0: i32) -> (i32, i32) {
    %c0_i32 = arith.constant 0 : i32
    %c0_i32_0 = arith.constant 0 : i32
    %c0_i32_1 = arith.constant 0 : i32
    return %c0_i32, %c0_i32_0 : i32, i32
  }
  func.func @transform_4(%arg0: i32) -> (i32, i32) {
    %c0_i32 = arith.constant 0 : i32
    %c0_i32_0 = arith.constant 0 : i32
    %c0_i32_1 = arith.constant 0 : i32
    return %c0_i32, %c0_i32_0 : i32, i32
  }
  func.func @transform_5(%arg0: i32) -> (i32, i32) {
    %c0_i32 = arith.constant 0 : i32
    %c0_i32_0 = arith.constant 0 : i32
    %c0_i32_1 = arith.constant 0 : i32
    return %c0_i32, %c0_i32_0 : i32, i32
  }
  func.func @transform_6(%arg0: i32) -> (i32, i32) {
    %c0_i32 = arith.constant 0 : i32
    %c0_i32_0 = arith.constant 0 : i32
    %c0_i32_1 = arith.constant 0 : i32
    return %c0_i32, %c0_i32_0 : i32, i32
  }
  func.func @transform_7(%arg0: i32) -> (i32, i32) {
    %c0_i32 = arith.constant 0 : i32
    %c0_i32_0 = arith.constant 0 : i32
    return %arg0, %c0_i32 : i32, i32
  }
}

module attributes {stable_mosaic.version = 11 : i64} {
  func.func @_channel_mix_kernel(%arg0: i32, %arg1: memref<16x128xf32, #tpu.memory_space<vmem>>, %arg2: memref<1x128xf32, #tpu.memory_space<vmem>>, %arg3: memref<1x128xf32, #tpu.memory_space<vmem>>, %arg4: memref<128x128xbf16, #tpu.memory_space<vmem>>, %arg5: memref<1x128xf32, #tpu.memory_space<vmem>>, %arg6: memref<128x128xbf16, #tpu.memory_space<vmem>>, %arg7: memref<1x128xf32, #tpu.memory_space<vmem>>, %arg8: memref<16x128xf32, #tpu.memory_space<vmem>>) attributes {dimension_semantics = [#tpu.dimension_semantics<parallel>], iteration_bounds = array<i64: 1>, scalar_prefetch = 0 : i64, scratch_operands = 0 : i64, tpu.core_type = #tpu.core_type<tc>, window_params = [{transform_indices = @transform_0, window_bounds = array<i64: 16, 128>}, {pipeline_mode = #tpu.pipeline_mode<synchronous>, transform_indices = @transform_1, window_bounds = array<i64: 1, 128>}, {pipeline_mode = #tpu.pipeline_mode<synchronous>, transform_indices = @transform_2, window_bounds = array<i64: 1, 128>}, {pipeline_mode = #tpu.pipeline_mode<synchronous>, transform_indices = @transform_3, window_bounds = array<i64: 128, 128>}, {pipeline_mode = #tpu.pipeline_mode<synchronous>, transform_indices = @transform_4, window_bounds = array<i64: 1, 128>}, {pipeline_mode = #tpu.pipeline_mode<synchronous>, transform_indices = @transform_5, window_bounds = array<i64: 128, 128>}, {pipeline_mode = #tpu.pipeline_mode<synchronous>, transform_indices = @transform_6, window_bounds = array<i64: 1, 128>}, {transform_indices = @transform_7, window_bounds = array<i64: 16, 128>}]} {
    %c0 = arith.constant 0 : index
    %c0_0 = arith.constant 0 : index
    %0 = vector.load %arg1[%c0, %c0_0] : memref<16x128xf32, #tpu.memory_space<vmem>>, vector<16x128xf32>
    %cst = arith.constant dense<0.000000e+00> : vector<16xf32>
    %1 = vector.multi_reduction <add>, %0, %cst [1] : vector<16x128xf32> to vector<16xf32>
    %2 = vector.shape_cast %1 : vector<16xf32> to vector<16x1xf32>
    %cst_1 = arith.constant 3.125000e-02 : f32
    %3 = vector.broadcast %cst_1 : f32 to vector<16x1xf32>
    %4 = arith.mulf %2, %3 : vector<16x1xf32>
    %5 = arith.mulf %0, %0 : vector<16x128xf32>
    %cst_2 = arith.constant dense<0.000000e+00> : vector<16xf32>
    %6 = vector.multi_reduction <add>, %5, %cst_2 [1] : vector<16x128xf32> to vector<16xf32>
    %7 = vector.shape_cast %6 : vector<16xf32> to vector<16x1xf32>
    %cst_3 = arith.constant 3.125000e-02 : f32
    %8 = vector.broadcast %cst_3 : f32 to vector<16x1xf32>
    %9 = arith.mulf %7, %8 : vector<16x1xf32>
    %10 = arith.mulf %4, %4 : vector<16x1xf32>
    %11 = arith.subf %9, %10 : vector<16x1xf32>
    %12 = vector.broadcast %4 : vector<16x1xf32> to vector<16x128xf32>
    %13 = arith.subf %0, %12 : vector<16x128xf32>
    %cst_4 = arith.constant 9.99999974E-6 : f32
    %14 = vector.broadcast %cst_4 : f32 to vector<16x1xf32>
    %15 = arith.addf %11, %14 : vector<16x1xf32>
    %16 = math.rsqrt %15 : vector<16x1xf32>
    %17 = vector.broadcast %16 : vector<16x1xf32> to vector<16x128xf32>
    %18 = arith.mulf %13, %17 : vector<16x128xf32>
    %c0_5 = arith.constant 0 : index
    %c0_6 = arith.constant 0 : index
    %19 = vector.load %arg2[%c0_5, %c0_6] : memref<1x128xf32, #tpu.memory_space<vmem>>, vector<1x128xf32>
    %20 = vector.broadcast %19 : vector<1x128xf32> to vector<16x128xf32>
    %21 = arith.mulf %18, %20 : vector<16x128xf32>
    %c0_7 = arith.constant 0 : index
    %c0_8 = arith.constant 0 : index
    %22 = vector.load %arg3[%c0_7, %c0_8] : memref<1x128xf32, #tpu.memory_space<vmem>>, vector<1x128xf32>
    %23 = vector.broadcast %22 : vector<1x128xf32> to vector<16x128xf32>
    %24 = arith.addf %21, %23 : vector<16x128xf32>
    %25 = arith.truncf %24 : vector<16x128xf32> to vector<16x128xbf16>
    %c0_9 = arith.constant 0 : index
    %c0_10 = arith.constant 0 : index
    %26 = vector.load %arg4[%c0_9, %c0_10] : memref<128x128xbf16, #tpu.memory_space<vmem>>, vector<128x128xbf16>
    %cst_11 = arith.constant dense<0.000000e+00> : vector<16x128xf32>
    %27 = tpu.matmul %25, %26, %cst_11 {dimension_numbers = #tpu.dot_dimension_numbers<[1], [0], [0], [1], [0, 0, 1, 1], [], []>} : vector<16x128xbf16>, vector<128x128xbf16>, vector<16x128xf32> -> vector<16x128xf32>
    %c0_12 = arith.constant 0 : index
    %c0_13 = arith.constant 0 : index
    %28 = vector.load %arg5[%c0_12, %c0_13] : memref<1x128xf32, #tpu.memory_space<vmem>>, vector<1x128xf32>
    %29 = vector.broadcast %28 : vector<1x128xf32> to vector<16x128xf32>
    %30 = arith.addf %27, %29 : vector<16x128xf32>
    %cst_14 = arith.constant 5.000000e-01 : f32
    %31 = vector.broadcast %cst_14 : f32 to vector<16x128xf32>
    %32 = arith.mulf %31, %30 : vector<16x128xf32>
    %cst_15 = arith.constant 0.707106769 : f32
    %33 = vector.broadcast %cst_15 : f32 to vector<16x128xf32>
    %34 = arith.mulf %30, %33 : vector<16x128xf32>
    %35 = math.erf %34 : vector<16x128xf32>
    %cst_16 = arith.constant 1.000000e+00 : f32
    %36 = vector.broadcast %cst_16 : f32 to vector<16x128xf32>
    %37 = arith.addf %36, %35 : vector<16x128xf32>
    %38 = arith.mulf %32, %37 : vector<16x128xf32>
    %39 = arith.truncf %38 : vector<16x128xf32> to vector<16x128xbf16>
    %c0_17 = arith.constant 0 : index
    %c0_18 = arith.constant 0 : index
    %40 = vector.load %arg6[%c0_17, %c0_18] : memref<128x128xbf16, #tpu.memory_space<vmem>>, vector<128x128xbf16>
    %cst_19 = arith.constant dense<0.000000e+00> : vector<16x128xf32>
    %41 = tpu.matmul %39, %40, %cst_19 {dimension_numbers = #tpu.dot_dimension_numbers<[1], [0], [0], [1], [0, 0, 1, 1], [], []>} : vector<16x128xbf16>, vector<128x128xbf16>, vector<16x128xf32> -> vector<16x128xf32>
    %c0_20 = arith.constant 0 : index
    %c0_21 = arith.constant 0 : index
    %42 = vector.load %arg7[%c0_20, %c0_21] : memref<1x128xf32, #tpu.memory_space<vmem>>, vector<1x128xf32>
    %43 = vector.broadcast %42 : vector<1x128xf32> to vector<16x128xf32>
    %44 = arith.addf %41, %43 : vector<16x128xf32>
    %c0_22 = arith.constant 0 : index
    %c0_23 = arith.constant 0 : index
    %45 = vector.load %arg8[%c0_22, %c0_23] : memref<16x128xf32, #tpu.memory_space<vmem>>, vector<16x128xf32>
    tpu.vector_store %arg8[%c0_22, %c0_23], %44 {strides = array<i32>} : memref<16x128xf32, #tpu.memory_space<vmem>>, vector<16x128xf32>,
    return
  }
  func.func @transform_0(%arg0: i32) -> (i32, i32) {
    %c0_i32 = arith.constant 0 : i32
    %c0_i32_0 = arith.constant 0 : i32
    return %arg0, %c0_i32 : i32, i32
  }
  func.func @transform_1(%arg0: i32) -> (i32, i32) {
    %c0_i32 = arith.constant 0 : i32
    %c0_i32_0 = arith.constant 0 : i32
    %c0_i32_1 = arith.constant 0 : i32
    return %c0_i32, %c0_i32_0 : i32, i32
  }
  func.func @transform_2(%arg0: i32) -> (i32, i32) {
    %c0_i32 = arith.constant 0 : i32
    %c0_i32_0 = arith.constant 0 : i32
    %c0_i32_1 = arith.constant 0 : i32
    return %c0_i32, %c0_i32_0 : i32, i32
  }
  func.func @transform_3(%arg0: i32) -> (i32, i32) {
    %c0_i32 = arith.constant 0 : i32
    %c0_i32_0 = arith.constant 0 : i32
    %c0_i32_1 = arith.constant 0 : i32
    return %c0_i32, %c0_i32_0 : i32, i32
  }
  func.func @transform_4(%arg0: i32) -> (i32, i32) {
    %c0_i32 = arith.constant 0 : i32
    %c0_i32_0 = arith.constant 0 : i32
    %c0_i32_1 = arith.constant 0 : i32
    return %c0_i32, %c0_i32_0 : i32, i32
  }
  func.func @transform_5(%arg0: i32) -> (i32, i32) {
    %c0_i32 = arith.constant 0 : i32
    %c0_i32_0 = arith.constant 0 : i32
    %c0_i32_1 = arith.constant 0 : i32
    return %c0_i32, %c0_i32_0 : i32, i32
  }
  func.func @transform_6(%arg0: i32) -> (i32, i32) {
    %c0_i32 = arith.constant 0 : i32
    %c0_i32_0 = arith.constant 0 : i32
    %c0_i32_1 = arith.constant 0 : i32
    return %c0_i32, %c0_i32_0 : i32, i32
  }
  func.func @transform_7(%arg0: i32) -> (i32, i32) {
    %c0_i32 = arith.constant 0 : i32
    %c0_i32_0 = arith.constant 0 : i32
    return %arg0, %c0_i32 : i32, i32
  }
}

</mosaic_0001>

<bundles_post_ra>
// kernel: tpu_custom_call.1
= control target key start
LH: loop header
LB: loop body
LE: loop exit
PB: predicated region body
PF: predicated region fallthrough
CT: control target
= control target key end

     0   :  { %12 = vsyncpa [#allocation3], 0  ;;  %s717_s0 = inlined_call_operand.hbm [shape: f32[16,128], index: 0, kind: input, shape index: {}]   ;;  %s718_s1 = inlined_call_operand.vmem [shape: f32[1,128], index: 1, kind: input, shape index: {}]   ;;  %s719_s2 = inlined_call_operand.vmem [shape: f32[1,128], index: 2, kind: input, shape index: {}]   ;;  %s720_s3 = inlined_call_operand.hbm [shape: bf16[128,128], index: 3, kind: input, shape index: {}]   ;;  %s721_s4 = inlined_call_operand.vmem [shape: f32[1,128], index: 4, kind: input, shape index: {}]   ;;  %s722_s5 = inlined_call_operand.hbm [shape: bf16[128,128], index: 5, kind: input, shape index: {}]   ;;  %s723_s6 = inlined_call_operand.vmem [shape: f32[1,128], index: 6, kind: input, shape index: {}]   ;;  %s724_s7 = inlined_call_operand.hbm [shape: f32[16,128], index: 7, kind: output, shape index: {}]  }
   0x1   :  { %13 = vsyncpa [#allocation6], 0 }
   0x2   :  { %14 = vsyncpa [#allocation4], 0  ;;  %s577_s24 = smov [#allocation5]   ;;  %s483_s28 = scalar_lea.hbm %s720_s3, 1024 }
   0x3   :  { %s36_s25 = sshll.u32 %s577_s24, 4  ;;  %p484_p0 = scmp.ne.s32.totalorder %s720_s3, %s483_s28  ;;  %s37_s25 = int_to_ptr.vmem [resolvable:$true] %s36_s25 }
   0x4   :  { %p487_p1 = scmp.lt.u32.totalorder %s483_s28, %s720_s3 }
   0x6   :  { %p489_p2 = pnand %p487_p1, %p484_p0 }
   0x8   :  { %492 = shalt.err (!%p489_p2)
}
   0x9   :  { %s493_s10 = scalar_lea.vmem %s37_s25, 1024  ;;  %p498_p4 = scmp.lt.s32.totalorder %s37_s25, %s37_s25 }
   0xa   :  { %p494_p3 = scmp.ne.s32.totalorder %s37_s25, %s493_s10  ;;  %p499_p5 = scmp.lt.s32.totalorder %s493_s10, %s493_s10 }
   0xc   :  { %p500_p6 = por %p499_p5, %p498_p4 }
   0xe   :  { %p501_p7 = pnand %p500_p6, %p494_p3 }
  0x10   :  { %504 = shalt.err (!%p501_p7)
}
  0x11   :  { %s578_s11 = smov 64   ;;  %s579_s12 = smov 4  }
  0x12   :  { %42 = dma.hbm_to_vmem [thread:$0]  %s720_s3, 1024, %s37_s25, [#allocation6], %s578_s11, %s578_s11, %s579_s12  }
  0x13   :  { %s580_s15 = smov [#allocation2]   ;;  %s505_s19 = scalar_lea.hbm %s717_s0, 256 }
  0x14   :  { %s20_s16 = sshll.u32 %s580_s15, 4  ;;  %p506_p8 = scmp.ne.s32.totalorder %s717_s0, %s505_s19  ;;  %s21_s16 = int_to_ptr.vmem [resolvable:$true] %s20_s16 }
  0x15   :  { %p509_p9 = scmp.lt.u32.totalorder %s505_s19, %s717_s0 }
  0x17   :  { %p511_p10 = pnand %p509_p9, %p506_p8 }
  0x19   :  { %514 = shalt.err (!%p511_p10)
}
  0x1a   :  { %s515_s24 = scalar_lea.vmem %s21_s16, 256  ;;  %p520_p12 = scmp.lt.s32.totalorder %s21_s16, %s21_s16 }
  0x1b   :  { %p516_p11 = scmp.ne.s32.totalorder %s21_s16, %s515_s24  ;;  %p521_p13 = scmp.lt.s32.totalorder %s515_s24, %s515_s24 }
  0x1d   :  { %p522_p0 = por %p521_p13, %p520_p12 }
  0x1f   :  { %p523_p1 = pnand %p522_p0, %p516_p11 }
  0x21   :  { %526 = shalt.err (!%p523_p1)
}
  0x22   :  { %s581_s3 = smov 128   ;;  %s582_s25 = smov 8  }
  0x23   :  { %26 = dma.hbm_to_vmem [thread:$0]  %s717_s0, 256, %s21_s16, [#allocation3], %s581_s3, %s581_s3, %s582_s25  }
  0x24   :  { %s583_s28 = smov [#allocation7]   ;;  %s527_s9 = scalar_lea.hbm %s722_s5, 1024 }
  0x25   :  { %s50_s29 = sshll.u32 %s583_s28, 4  ;;  %p528_p2 = scmp.ne.s32.totalorder %s722_s5, %s527_s9  ;;  %s51_s29 = int_to_ptr.vmem [resolvable:$true] %s50_s29 }
  0x26   :  { %p531_p3 = scmp.lt.u32.totalorder %s527_s9, %s722_s5 }
  0x28   :  { %p533_p4 = pnand %p531_p3, %p528_p2 }
  0x2a   :  { %536 = shalt.err (!%p533_p4)
}
  0x2b   :  { %s537_s17 = scalar_lea.vmem %s51_s29, 1024  ;;  %p542_p6 = scmp.lt.s32.totalorder %s51_s29, %s51_s29 }
  0x2c   :  { %p538_p5 = scmp.ne.s32.totalorder %s51_s29, %s537_s17  ;;  %p543_p7 = scmp.lt.s32.totalorder %s537_s17, %s537_s17 }
  0x2e   :  { %p544_p8 = por %p543_p7, %p542_p6 }
  0x30   :  { %p545_p9 = pnand %p544_p8, %p538_p5 }
  0x32   :  { %548 = shalt.err (!%p545_p9)
}
  0x33   :  { %56 = dma.hbm_to_vmem [thread:$0]  %s722_s5, 1024, %s51_s29, [#allocation6], %s578_s11, %s578_s11, %s579_s12  }
  0x34   :  { %571 = dma.done.wait [#allocation3], 256  }
  0x35   :  { %572 = vsyncadd [#allocation3], 4294967040 }
  0x36   :  { %573 = dma.done.wait [#allocation6], 2048  }
  0x37   :  { %574 = vsyncadd [#allocation6], 4294965248  ;;  %v584_v0 = vmov 0.0   ;;  %v69_v1 = vld [vmem:[#allocation2] sm:$0xff]  ;;  %v70_v2 = vld [vmem:[#allocation2 + $0x8] sm:$0xff]  ;;  %vm585_vm0 = vmmov 0  }
  0x38   :  { %409 = vmatprep.subr.bf16.mxu0 %v584_v0  ;;  %429 = vmatprep.subr.bf16.mxu1 %v584_v0  ;;  %v77_v3 = vmul.f32 %v69_v1, %v69_v1  ;;  %v78_v4 = vmul.f32 %v70_v2, %v70_v2  ;;  %v459_v5 = vld [vmem:[#allocation5] sm:$0xff]   ;;  %v460_v6 = vld [vmem:[#allocation5 + $0x8] sm:$0xff]   ;;  %v461_v7 = vld [vmem:[#allocation5 + $0x10] sm:$0xff]   ;;  %s586_s20 = smov [#allocation8]  }
  0x39   :  { %71 = vadd.xlane.f32.xlu0 %v69_v1  ;;  %410 = vmatpush3.bf16.msra.mxu0 %v459_v5  ;;  %v462_v8 = vld [vmem:[#allocation5 + $0x18] sm:$0xff]   ;;  %v463_v9 = vld [vmem:[#allocation5 + $0x20] sm:$0xff]   ;;  %v464_v10 = vld [vmem:[#allocation5 + $0x28] sm:$0xff]   ;;  %s358_s21 = sshll.u32 %s586_s20, 4  ;;  %s359_s21 = int_to_ptr.vmem [resolvable:$true] %s358_s21 }
  0x3a   :  { %79 = vadd.xlane.f32.xlu1 %v77_v3  ;;  %411 = vmatprep.subr.bf16.mxu0 %v584_v0  ;;  %v465_v11 = vld [vmem:[#allocation5 + $0x30] sm:$0xff]   ;;  %v466_v12 = vld [vmem:[#allocation5 + $0x38] sm:$0xff]   ;;  %v467_v13 = vld [vmem:[#allocation7] sm:$0xff]   ;;  %s549_s22 = scalar_lea.vmem %s359_s21, 256  ;;  %p554_p11 = scmp.lt.s32.totalorder %s359_s21, %s359_s21 }
  0x3b   :  { %425 = vmatprep.mubr.msk.bf16.mxu0 %vm585_vm0, %v584_v0  ;;  %445 = vmatprep.mubr.msk.bf16.mxu1 %vm585_vm0, %v584_v0  ;;  %v468_v14 = vld [vmem:[#allocation7 + $0x8] sm:$0xff]   ;;  %v371_v32 = vld [vmem:[%s718_s1] ss:$0 sm:$0xff]  ;;  %v470_v43 = vld [vmem:[#allocation7 + $0x18] sm:$0xff]   ;;  %p550_p10 = scmp.ne.s32.totalorder %s359_s21, %s549_s22  ;;  %p555_p12 = scmp.lt.s32.totalorder %s549_s22, %s549_s22 }
  0x3c   :  { %430 = vmatpush3.bf16.msra.mxu1 %v467_v13  ;;  %v372_v37 = vld [vmem:[%s719_s2] ss:$0 sm:$0xff]  ;;  %v471_v44 = vld [vmem:[#allocation7 + $0x20] sm:$0xff]   ;;  %v472_v45 = vld [vmem:[#allocation7 + $0x28] sm:$0xff]  }
  0x3d   :  { %73 = vadd.xlane.f32.xlu0 %v70_v2  ;;  %412 = vmatpush3.bf16.msra.mxu0 %v460_v6  ;;  %v469_v42 = vld [vmem:[#allocation7 + $0x10] sm:$0xff]   ;;  %v474_v47 = vld [vmem:[#allocation7 + $0x38] sm:$0xff]   ;;  %p556_p13 = por %p555_p12, %p554_p11 }
  0x3e   :  { %81 = vadd.xlane.f32.xlu1 %v78_v4  ;;  %413 = vmatprep.subr.bf16.mxu0 %v584_v0  ;;  %v473_v46 = vld [vmem:[#allocation7 + $0x30] sm:$0xff]  }
  0x3f   :  { %431 = vmatprep.subr.bf16.mxu1 %v584_v0  ;;  %v373_v48 = vld [vmem:[%s721_s4] ss:$0 sm:$0xff]  ;;  %p557_p0 = pnand %p556_p13, %p550_p10 }
  0x40   :  { %432 = vmatpush3.bf16.msra.mxu1 %v468_v14 }
  0x41   :  { %414 = vmatpush3.bf16.msra.mxu0 %v461_v7  ;;  %433 = vmatprep.subr.bf16.mxu1 %v584_v0 }
  0x42   :  { %415 = vmatprep.subr.bf16.mxu0 %v584_v0 }
  0x44   :  { %434 = vmatpush3.bf16.msra.mxu1 %v469_v42 }
  0x45   :  { %416 = vmatpush3.bf16.msra.mxu0 %v462_v8  ;;  %435 = vmatprep.subr.bf16.mxu1 %v584_v0 }
  0x46   :  { %417 = vmatprep.subr.bf16.mxu0 %v584_v0 }
  0x48   :  { %436 = vmatpush3.bf16.msra.mxu1 %v470_v43 }
  0x49   :  { %418 = vmatpush3.bf16.msra.mxu0 %v463_v9  ;;  %437 = vmatprep.subr.bf16.mxu1 %v584_v0 }
  0x4a   :  { %419 = vmatprep.subr.bf16.mxu0 %v584_v0 }
  0x4c   :  { %438 = vmatpush3.bf16.msra.mxu1 %v471_v44 }
  0x4d   :  { %420 = vmatpush3.bf16.msra.mxu0 %v464_v10  ;;  %439 = vmatprep.subr.bf16.mxu1 %v584_v0 }
  0x4e   :  { %421 = vmatprep.subr.bf16.mxu0 %v584_v0 }
  0x50   :  { %440 = vmatpush3.bf16.msra.mxu1 %v472_v45 }
  0x51   :  { %422 = vmatpush3.bf16.msra.mxu0 %v465_v11  ;;  %441 = vmatprep.subr.bf16.mxu1 %v584_v0 }
  0x52   :  { %423 = vmatprep.subr.bf16.mxu0 %v584_v0 }
  0x54   :  { %442 = vmatpush3.bf16.msra.mxu1 %v473_v46 }
  0x55   :  { %424 = vmatpush3.bf16.msra.mxu0 %v466_v12  ;;  %443 = vmatprep.subr.bf16.mxu1 %v584_v0 }
  0x58   :  { %444 = vmatpush3.bf16.msra.mxu1 %v474_v47 }
  0xc6   :  { %v72_v15 = vpop.xlane.xlu0 %71 }
  0xc7   :  { %v75_v16 = vmul.f32 0.03125, %v72_v15  ;;  %v80_v17 = vpop.xlane.xlu1 %79 }
  0xc8   :  { %v83_v19 = vmul.f32 0.03125, %v80_v17 }
  0xc9   :  { %v85_v18 = vmul.f32 %v75_v16, %v75_v16  ;;  %v89_v29 = vsub.f32 %v69_v1, %v75_v16 }
  0xca   :  { %v74_v20 = vpop.xlane.xlu0 %73 }
  0xcb   :  { %v87_v21 = vsub.f32 %v83_v19, %v85_v18  ;;  %v76_v22 = vmul.f32 0.03125, %v74_v20  ;;  %v82_v23 = vpop.xlane.xlu1 %81 }
  0xcc   :  { %v84_v26 = vmul.f32 0.03125, %v82_v23 }
  0xcd   :  { %v91_v24 = vadd.f32 1e-05, %v87_v21  ;;  %v86_v25 = vmul.f32 %v76_v22, %v76_v22  ;;  %v90_v33 = vsub.f32 %v70_v2, %v76_v22  ;;  %v382_v2 = vld [vmem:[%s723_s6] ss:$0 sm:$0xff] }
  0xcf   :  { %475 = vrsqrt.f32 %v91_v24  ;;  %v88_v27 = vsub.f32 %v84_v26, %v86_v25 }
  0xd1   :  { %v92_v28 = vadd.f32 1e-05, %v88_v27 }
  0xd3   :  { %477 = vrsqrt.f32 %v92_v28 }
  0xd9   :  { %v476_v30 = vpop.eup %475 }
  0xda   :  { %v95_v31 = vmul.f32 %v476_v30, %v89_v29 }
  0xdc   :  { %v104_v36 = vmul.f32 %v371_v32, %v95_v31 }
  0xdd   :  { %v478_v34 = vpop.eup %477 }
  0xde   :  { %v96_v35 = vmul.f32 %v478_v34, %v90_v33  ;;  %v113_v39 = vadd.f32 %v372_v37, %v104_v36 }
  0xe0   :  { %v105_v38 = vmul.f32 %v371_v32, %v96_v35 }
  0xe2   :  { %v114_v40 = vadd.f32 %v372_v37, %v105_v38 }
  0xe4   :  { %v115_v41 = vpack.c.bf16 %v114_v40, %v113_v39 }
  0xe6   :  { %426 = vmatmul.mubr.bf16.vlgmr.msra.gmra.mrb[0].mxu0 %v115_v41 }
 0x1b9   :  { %v221_v49 = vpop.f32.mrb[0].mxu0 }
 0x1ba   :  { %v222_v50 = vadd.f32 %v373_v48, %v221_v49  ;;  %v427_v51 = vpop.f32.mrb[1].mxu0 }
 0x1bb   :  { %v224_v52 = vpop.f32.mrb[2].mxu0 }
 0x1bc   :  { %v230_v53 = vmul.f32 0.70710677, %v222_v50  ;;  %v225_v54 = vadd.f32 %v373_v48, %v224_v52  ;;  %v428_v55 = vpop.f32.mrb[3].mxu0  ;;  %v228_v60 = vmul.f32 0.5, %v222_v50 }
 0x1be   :  { %479 = verf.f32 %v230_v53  ;;  %v231_v56 = vmul.f32 0.70710677, %v225_v54  ;;  %v229_v61 = vmul.f32 0.5, %v225_v54 }
 0x1c0   :  { %481 = verf.f32 %v231_v56 }
 0x1c8   :  { %v480_v57 = vpop.eup %479 }
 0x1c9   :  { %v234_v58 = vadd.f32 1.0, %v480_v57 }
 0x1ca   :  { %v482_v59 = vpop.eup %481 }
 0x1cb   :  { %v235_v62 = vadd.f32 1.0, %v482_v59  ;;  %v236_v63 = vmul.f32 %v234_v58, %v228_v60 }
 0x1cd   :  { %v237_v0 = vmul.f32 %v235_v62, %v229_v61 }
 0x1cf   :  { %v238_v1 = vpack.c.bf16 %v237_v0, %v236_v63 }
 0x1d1   :  { %446 = vmatmul.mubr.bf16.vlgmr.msra.gmra.mrb[0].mxu1 %v238_v1 }
 0x2a4   :  { %v344_v3 = vpop.f32.mrb[0].mxu1 }
 0x2a5   :  { %v345_v4 = vadd.f32 %v382_v2, %v344_v3  ;;  %v447_v5 = vpop.f32.mrb[1].mxu1 }
 0x2a6   :  { %v347_v6 = vpop.f32.mrb[2].mxu1 }
 0x2a7   :  { %351 = vst [vmem:[#allocation8] sm:$0xff] %v345_v4  ;;  %v348_v7 = vadd.f32 %v382_v2, %v347_v6  ;;  %v448_v8 = vpop.f32.mrb[3].mxu1 }
 0x2a9   :  { %352 = vst [vmem:[#allocation8 + $0x8] sm:$0xff] %v348_v7 }
 0x2aa   :  { %560 = shalt.err (!%p557_p0)
}
 0x2ab   :  { %s561_s24 = scalar_lea.hbm %s724_s7, 256 }
 0x2ac   :  { %p562_p1 = scmp.ne.s32.totalorder %s724_s7, %s561_s24  ;;  %p565_p2 = scmp.lt.u32.totalorder %s561_s24, %s724_s7 }
 0x2ae   :  { %p567_p3 = pnand %p565_p2, %p562_p1 }
 0x2b0   :  { %570 = shalt.err (!%p567_p3)
}
 0x2b1   :  { %364 = dma.vmem_to_hbm [thread:$0]  %s359_s21, 256, %s724_s7, [#allocation4], %s581_s3, %s581_s3, %s582_s25  }
 0x2b2   :  { %575 = dma.done.wait [#allocation4], 256  }
 0x2b3   :  { %576 = vsyncadd [#allocation4], 4294967040 }
 0x2b4   :  { %368 = vsyncpa [#allocation3], 1 }
 0x2b5   :  { %369 = vsyncpa [#allocation6], 1 }
 0x2b6   :  { %370 = vsyncpa [#allocation4], 1 }

// kernel: tpu_custom_call.1
= control target key start
LH: loop header
LB: loop body
LE: loop exit
PB: predicated region body
PF: predicated region fallthrough
CT: control target
= control target key end

     0   :  { %12 = vsyncpa [#allocation3], 0  ;;  %s717_s0 = inlined_call_operand.hbm [shape: f32[16,128], index: 0, kind: input, shape index: {}]   ;;  %s718_s1 = inlined_call_operand.vmem [shape: f32[1,128], index: 1, kind: input, shape index: {}]   ;;  %s719_s2 = inlined_call_operand.vmem [shape: f32[1,128], index: 2, kind: input, shape index: {}]   ;;  %s720_s3 = inlined_call_operand.hbm [shape: bf16[128,128], index: 3, kind: input, shape index: {}]   ;;  %s721_s4 = inlined_call_operand.vmem [shape: f32[1,128], index: 4, kind: input, shape index: {}]   ;;  %s722_s5 = inlined_call_operand.hbm [shape: bf16[128,128], index: 5, kind: input, shape index: {}]   ;;  %s723_s6 = inlined_call_operand.vmem [shape: f32[1,128], index: 6, kind: input, shape index: {}]   ;;  %s724_s7 = inlined_call_operand.hbm [shape: f32[16,128], index: 7, kind: output, shape index: {}]  }
   0x1   :  { %13 = vsyncpa [#allocation6], 0 }
   0x2   :  { %14 = vsyncpa [#allocation4], 0  ;;  %s577_s24 = smov [#allocation5]   ;;  %s483_s28 = scalar_lea.hbm %s720_s3, 1024 }
   0x3   :  { %s36_s25 = sshll.u32 %s577_s24, 4  ;;  %p484_p0 = scmp.ne.s32.totalorder %s720_s3, %s483_s28  ;;  %s37_s25 = int_to_ptr.vmem [resolvable:$true] %s36_s25 }
   0x4   :  { %p487_p1 = scmp.lt.u32.totalorder %s483_s28, %s720_s3 }
   0x6   :  { %p489_p2 = pnand %p487_p1, %p484_p0 }
   0x8   :  { %492 = shalt.err (!%p489_p2)
}
   0x9   :  { %s493_s10 = scalar_lea.vmem %s37_s25, 1024  ;;  %p498_p4 = scmp.lt.s32.totalorder %s37_s25, %s37_s25 }
   0xa   :  { %p494_p3 = scmp.ne.s32.totalorder %s37_s25, %s493_s10  ;;  %p499_p5 = scmp.lt.s32.totalorder %s493_s10, %s493_s10 }
   0xc   :  { %p500_p6 = por %p499_p5, %p498_p4 }
   0xe   :  { %p501_p7 = pnand %p500_p6, %p494_p3 }
  0x10   :  { %504 = shalt.err (!%p501_p7)
}
  0x11   :  { %s578_s11 = smov 64   ;;  %s579_s12 = smov 4  }
  0x12   :  { %42 = dma.hbm_to_vmem [thread:$0]  %s720_s3, 1024, %s37_s25, [#allocation6], %s578_s11, %s578_s11, %s579_s12  }
  0x13   :  { %s580_s15 = smov [#allocation2]   ;;  %s505_s19 = scalar_lea.hbm %s717_s0, 256 }
  0x14   :  { %s20_s16 = sshll.u32 %s580_s15, 4  ;;  %p506_p8 = scmp.ne.s32.totalorder %s717_s0, %s505_s19  ;;  %s21_s16 = int_to_ptr.vmem [resolvable:$true] %s20_s16 }
  0x15   :  { %p509_p9 = scmp.lt.u32.totalorder %s505_s19, %s717_s0 }
  0x17   :  { %p511_p10 = pnand %p509_p9, %p506_p8 }
  0x19   :  { %514 = shalt.err (!%p511_p10)
}
  0x1a   :  { %s515_s24 = scalar_lea.vmem %s21_s16, 256  ;;  %p520_p12 = scmp.lt.s32.totalorder %s21_s16, %s21_s16 }
  0x1b   :  { %p516_p11 = scmp.ne.s32.totalorder %s21_s16, %s515_s24  ;;  %p521_p13 = scmp.lt.s32.totalorder %s515_s24, %s515_s24 }
  0x1d   :  { %p522_p0 = por %p521_p13, %p520_p12 }
  0x1f   :  { %p523_p1 = pnand %p522_p0, %p516_p11 }
  0x21   :  { %526 = shalt.err (!%p523_p1)
}
  0x22   :  { %s581_s3 = smov 128   ;;  %s582_s25 = smov 8  }
  0x23   :  { %26 = dma.hbm_to_vmem [thread:$0]  %s717_s0, 256, %s21_s16, [#allocation3], %s581_s3, %s581_s3, %s582_s25  }
  0x24   :  { %s583_s28 = smov [#allocation7]   ;;  %s527_s9 = scalar_lea.hbm %s722_s5, 1024 }
  0x25   :  { %s50_s29 = sshll.u32 %s583_s28, 4  ;;  %p528_p2 = scmp.ne.s32.totalorder %s722_s5, %s527_s9  ;;  %s51_s29 = int_to_ptr.vmem [resolvable:$true] %s50_s29 }
  0x26   :  { %p531_p3 = scmp.lt.u32.totalorder %s527_s9, %s722_s5 }
  0x28   :  { %p533_p4 = pnand %p531_p3, %p528_p2 }
  0x2a   :  { %536 = shalt.err (!%p533_p4)
}
  0x2b   :  { %s537_s17 = scalar_lea.vmem %s51_s29, 1024  ;;  %p542_p6 = scmp.lt.s32.totalorder %s51_s29, %s51_s29 }
  0x2c   :  { %p538_p5 = scmp.ne.s32.totalorder %s51_s29, %s537_s17  ;;  %p543_p7 = scmp.lt.s32.totalorder %s537_s17, %s537_s17 }
  0x2e   :  { %p544_p8 = por %p543_p7, %p542_p6 }
  0x30   :  { %p545_p9 = pnand %p544_p8, %p538_p5 }
  0x32   :  { %548 = shalt.err (!%p545_p9)
}
  0x33   :  { %56 = dma.hbm_to_vmem [thread:$0]  %s722_s5, 1024, %s51_s29, [#allocation6], %s578_s11, %s578_s11, %s579_s12  }
  0x34   :  { %571 = dma.done.wait [#allocation3], 256  }
  0x35   :  { %572 = vsyncadd [#allocation3], 4294967040 }
  0x36   :  { %573 = dma.done.wait [#allocation6], 2048  }
  0x37   :  { %574 = vsyncadd [#allocation6], 4294965248  ;;  %v584_v0 = vmov 0.0   ;;  %v69_v1 = vld [vmem:[#allocation2] sm:$0xff]  ;;  %v70_v2 = vld [vmem:[#allocation2 + $0x8] sm:$0xff]  ;;  %vm585_vm0 = vmmov 0  }
  0x38   :  { %409 = vmatprep.subr.bf16.mxu0 %v584_v0  ;;  %429 = vmatprep.subr.bf16.mxu1 %v584_v0  ;;  %v77_v3 = vmul.f32 %v69_v1, %v69_v1  ;;  %v78_v4 = vmul.f32 %v70_v2, %v70_v2  ;;  %v459_v5 = vld [vmem:[#allocation5] sm:$0xff]   ;;  %v460_v6 = vld [vmem:[#allocation5 + $0x8] sm:$0xff]   ;;  %v461_v7 = vld [vmem:[#allocation5 + $0x10] sm:$0xff]   ;;  %s586_s20 = smov [#allocation8]  }
  0x39   :  { %71 = vadd.xlane.f32.xlu0 %v69_v1  ;;  %410 = vmatpush3.bf16.msra.mxu0 %v459_v5  ;;  %v462_v8 = vld [vmem:[#allocation5 + $0x18] sm:$0xff]   ;;  %v463_v9 = vld [vmem:[#allocation5 + $0x20] sm:$0xff]   ;;  %v464_v10 = vld [vmem:[#allocation5 + $0x28] sm:$0xff]   ;;  %s358_s21 = sshll.u32 %s586_s20, 4  ;;  %s359_s21 = int_to_ptr.vmem [resolvable:$true] %s358_s21 }
  0x3a   :  { %79 = vadd.xlane.f32.xlu1 %v77_v3  ;;  %411 = vmatprep.subr.bf16.mxu0 %v584_v0  ;;  %v465_v11 = vld [vmem:[#allocation5 + $0x30] sm:$0xff]   ;;  %v466_v12 = vld [vmem:[#allocation5 + $0x38] sm:$0xff]   ;;  %v467_v13 = vld [vmem:[#allocation7] sm:$0xff]   ;;  %s549_s22 = scalar_lea.vmem %s359_s21, 256  ;;  %p554_p11 = scmp.lt.s32.totalorder %s359_s21, %s359_s21 }
  0x3b   :  { %425 = vmatprep.mubr.msk.bf16.mxu0 %vm585_vm0, %v584_v0  ;;  %445 = vmatprep.mubr.msk.bf16.mxu1 %vm585_vm0, %v584_v0  ;;  %v468_v14 = vld [vmem:[#allocation7 + $0x8] sm:$0xff]   ;;  %v371_v32 = vld [vmem:[%s718_s1] ss:$0 sm:$0xff]  ;;  %v470_v43 = vld [vmem:[#allocation7 + $0x18] sm:$0xff]   ;;  %p550_p10 = scmp.ne.s32.totalorder %s359_s21, %s549_s22  ;;  %p555_p12 = scmp.lt.s32.totalorder %s549_s22, %s549_s22 }
  0x3c   :  { %430 = vmatpush3.bf16.msra.mxu1 %v467_v13  ;;  %v372_v37 = vld [vmem:[%s719_s2] ss:$0 sm:$0xff]  ;;  %v471_v44 = vld [vmem:[#allocation7 + $0x20] sm:$0xff]   ;;  %v472_v45 = vld [vmem:[#allocation7 + $0x28] sm:$0xff]  }
  0x3d   :  { %73 = vadd.xlane.f32.xlu0 %v70_v2  ;;  %412 = vmatpush3.bf16.msra.mxu0 %v460_v6  ;;  %v469_v42 = vld [vmem:[#allocation7 + $0x10] sm:$0xff]   ;;  %v474_v47 = vld [vmem:[#allocation7 + $0x38] sm:$0xff]   ;;  %p556_p13 = por %p555_p12, %p554_p11 }
  0x3e   :  { %81 = vadd.xlane.f32.xlu1 %v78_v4  ;;  %413 = vmatprep.subr.bf16.mxu0 %v584_v0  ;;  %v473_v46 = vld [vmem:[#allocation7 + $0x30] sm:$0xff]  }
  0x3f   :  { %431 = vmatprep.subr.bf16.mxu1 %v584_v0  ;;  %v373_v48 = vld [vmem:[%s721_s4] ss:$0 sm:$0xff]  ;;  %p557_p0 = pnand %p556_p13, %p550_p10 }
  0x40   :  { %432 = vmatpush3.bf16.msra.mxu1 %v468_v14 }
  0x41   :  { %414 = vmatpush3.bf16.msra.mxu0 %v461_v7  ;;  %433 = vmatprep.subr.bf16.mxu1 %v584_v0 }
  0x42   :  { %415 = vmatprep.subr.bf16.mxu0 %v584_v0 }
  0x44   :  { %434 = vmatpush3.bf16.msra.mxu1 %v469_v42 }
  0x45   :  { %416 = vmatpush3.bf16.msra.mxu0 %v462_v8  ;;  %435 = vmatprep.subr.bf16.mxu1 %v584_v0 }
  0x46   :  { %417 = vmatprep.subr.bf16.mxu0 %v584_v0 }
  0x48   :  { %436 = vmatpush3.bf16.msra.mxu1 %v470_v43 }
  0x49   :  { %418 = vmatpush3.bf16.msra.mxu0 %v463_v9  ;;  %437 = vmatprep.subr.bf16.mxu1 %v584_v0 }
  0x4a   :  { %419 = vmatprep.subr.bf16.mxu0 %v584_v0 }
  0x4c   :  { %438 = vmatpush3.bf16.msra.mxu1 %v471_v44 }
  0x4d   :  { %420 = vmatpush3.bf16.msra.mxu0 %v464_v10  ;;  %439 = vmatprep.subr.bf16.mxu1 %v584_v0 }
  0x4e   :  { %421 = vmatprep.subr.bf16.mxu0 %v584_v0 }
  0x50   :  { %440 = vmatpush3.bf16.msra.mxu1 %v472_v45 }
  0x51   :  { %422 = vmatpush3.bf16.msra.mxu0 %v465_v11  ;;  %441 = vmatprep.subr.bf16.mxu1 %v584_v0 }
  0x52   :  { %423 = vmatprep.subr.bf16.mxu0 %v584_v0 }
  0x54   :  { %442 = vmatpush3.bf16.msra.mxu1 %v473_v46 }
  0x55   :  { %424 = vmatpush3.bf16.msra.mxu0 %v466_v12  ;;  %443 = vmatprep.subr.bf16.mxu1 %v584_v0 }
  0x58   :  { %444 = vmatpush3.bf16.msra.mxu1 %v474_v47 }
  0xc6   :  { %v72_v15 = vpop.xlane.xlu0 %71 }
  0xc7   :  { %v75_v16 = vmul.f32 0.03125, %v72_v15  ;;  %v80_v17 = vpop.xlane.xlu1 %79 }
  0xc8   :  { %v83_v19 = vmul.f32 0.03125, %v80_v17 }
  0xc9   :  { %v85_v18 = vmul.f32 %v75_v16, %v75_v16  ;;  %v89_v29 = vsub.f32 %v69_v1, %v75_v16 }
  0xca   :  { %v74_v20 = vpop.xlane.xlu0 %73 }
  0xcb   :  { %v87_v21 = vsub.f32 %v83_v19, %v85_v18  ;;  %v76_v22 = vmul.f32 0.03125, %v74_v20  ;;  %v82_v23 = vpop.xlane.xlu1 %81 }
  0xcc   :  { %v84_v26 = vmul.f32 0.03125, %v82_v23 }
  0xcd   :  { %v91_v24 = vadd.f32 1e-05, %v87_v21  ;;  %v86_v25 = vmul.f32 %v76_v22, %v76_v22  ;;  %v90_v33 = vsub.f32 %v70_v2, %v76_v22  ;;  %v382_v2 = vld [vmem:[%s723_s6] ss:$0 sm:$0xff] }
  0xcf   :  { %475 = vrsqrt.f32 %v91_v24  ;;  %v88_v27 = vsub.f32 %v84_v26, %v86_v25 }
  0xd1   :  { %v92_v28 = vadd.f32 1e-05, %v88_v27 }
  0xd3   :  { %477 = vrsqrt.f32 %v92_v28 }
  0xd9   :  { %v476_v30 = vpop.eup %475 }
  0xda   :  { %v95_v31 = vmul.f32 %v476_v30, %v89_v29 }
  0xdc   :  { %v104_v36 = vmul.f32 %v371_v32, %v95_v31 }
  0xdd   :  { %v478_v34 = vpop.eup %477 }
  0xde   :  { %v96_v35 = vmul.f32 %v478_v34, %v90_v33  ;;  %v113_v39 = vadd.f32 %v372_v37, %v104_v36 }
  0xe0   :  { %v105_v38 = vmul.f32 %v371_v32, %v96_v35 }
  0xe2   :  { %v114_v40 = vadd.f32 %v372_v37, %v105_v38 }
  0xe4   :  { %v115_v41 = vpack.c.bf16 %v114_v40, %v113_v39 }
  0xe6   :  { %426 = vmatmul.mubr.bf16.vlgmr.msra.gmra.mrb[0].mxu0 %v115_v41 }
 0x1b9   :  { %v221_v49 = vpop.f32.mrb[0].mxu0 }
 0x1ba   :  { %v222_v50 = vadd.f32 %v373_v48, %v221_v49  ;;  %v427_v51 = vpop.f32.mrb[1].mxu0 }
 0x1bb   :  { %v224_v52 = vpop.f32.mrb[2].mxu0 }
 0x1bc   :  { %v230_v53 = vmul.f32 0.70710677, %v222_v50  ;;  %v225_v54 = vadd.f32 %v373_v48, %v224_v52  ;;  %v428_v55 = vpop.f32.mrb[3].mxu0  ;;  %v228_v60 = vmul.f32 0.5, %v222_v50 }
 0x1be   :  { %479 = verf.f32 %v230_v53  ;;  %v231_v56 = vmul.f32 0.70710677, %v225_v54  ;;  %v229_v61 = vmul.f32 0.5, %v225_v54 }
 0x1c0   :  { %481 = verf.f32 %v231_v56 }
 0x1c8   :  { %v480_v57 = vpop.eup %479 }
 0x1c9   :  { %v234_v58 = vadd.f32 1.0, %v480_v57 }
 0x1ca   :  { %v482_v59 = vpop.eup %481 }
 0x1cb   :  { %v235_v62 = vadd.f32 1.0, %v482_v59  ;;  %v236_v63 = vmul.f32 %v234_v58, %v228_v60 }
 0x1cd   :  { %v237_v0 = vmul.f32 %v235_v62, %v229_v61 }
 0x1cf   :  { %v238_v1 = vpack.c.bf16 %v237_v0, %v236_v63 }
 0x1d1   :  { %446 = vmatmul.mubr.bf16.vlgmr.msra.gmra.mrb[0].mxu1 %v238_v1 }
 0x2a4   :  { %v344_v3 = vpop.f32.mrb[0].mxu1 }
 0x2a5   :  { %v345_v4 = vadd.f32 %v382_v2, %v344_v3  ;;  %v447_v5 = vpop.f32.mrb[1].mxu1 }
 0x2a6   :  { %v347_v6 = vpop.f32.mrb[2].mxu1 }
 0x2a7   :  { %351 = vst [vmem:[#allocation8] sm:$0xff] %v345_v4  ;;  %v348_v7 = vadd.f32 %v382_v2, %v347_v6  ;;  %v448_v8 = vpop.f32.mrb[3].mxu1 }
 0x2a9   :  { %352 = vst [vmem:[#allocation8 + $0x8] sm:$0xff] %v348_v7 }
 0x2aa   :  { %560 = shalt.err (!%p557_p0)
}
 0x2ab   :  { %s561_s24 = scalar_lea.hbm %s724_s7, 256 }
 0x2ac   :  { %p562_p1 = scmp.ne.s32.totalorder %s724_s7, %s561_s24  ;;  %p565_p2 = scmp.lt.u32.totalorder %s561_s24, %s724_s7 }
 0x2ae   :  { %p567_p3 = pnand %p565_p2, %p562_p1 }
 0x2b0   :  { %570 = shalt.err (!%p567_p3)
}
 0x2b1   :  { %364 = dma.vmem_to_hbm [thread:$0]  %s359_s21, 256, %s724_s7, [#allocation4], %s581_s3, %s581_s3, %s582_s25  }
 0x2b2   :  { %575 = dma.done.wait [#allocation4], 256  }
 0x2b3   :  { %576 = vsyncadd [#allocation4], 4294967040 }
 0x2b4   :  { %368 = vsyncpa [#allocation3], 1 }
 0x2b5   :  { %369 = vsyncpa [#allocation6], 1 }
 0x2b6   :  { %370 = vsyncpa [#allocation4], 1 }

</bundles_post_ra>
